<compile_context>
chip_gen: v5e
topology: v5e:2x2
jax: 0.10.0
libtpu: 0.0.40
codegen_flags: <defaults>
</compile_context>

<pallas_src>
import numpy as np
import jax
import jax.numpy as jnp
from jax import lax
from jax.experimental import pallas as pl
from jax.experimental.pallas import tpu as pltpu


def _make_kernel(F, TF, tiles_per_chunk, needs_mask):
    """Build the spectral-convergence partial-sum kernel.

    grid = (B, C, tiles_per_chunk); axis 2 is the row-tile reduction axis.
      pred_ref / targ_ref : (1, TF, T) tiles in the *source* dtype.
      num_ref / den_ref   : (1, 1, 1, 1) per-(batch, chunk) partial sums of
                            (target - pred)^2 and target^2.
      acc_ref             : VMEM (2, 8, T) f32 running vreg-aligned partials.
    """
    rows8 = (TF % 8 == 0)

    def kernel(pred_ref, targ_ref, num_ref, den_ref, acc_ref):
        t = pl.program_id(2)
        nt = pl.num_programs(2)

        @pl.when(t == 0)
        def _():
            acc_ref[...] = jnp.zeros_like(acc_ref)

        p = pred_ref[0].astype(jnp.float32)   # (TF, T)
        q = targ_ref[0].astype(jnp.float32)   # (TF, T)

        if needs_mask:
            # Global (unclamped) row-tile index; zero out rows >= F (the
            # ragged tail / duplicated clamped tile reads unspecified data).
            c = pl.program_id(1)
            gt = c * tiles_per_chunk + t
            rows = gt * TF + lax.broadcasted_iota(jnp.int32, (TF, 1), 0)
            valid = rows < F
            p = jnp.where(valid, p, 0.0)
            q = jnp.where(valid, q, 0.0)

        d = q - p
        dd = d * d
        qq = q * q
        if rows8:
            T = dd.shape[-1]
            # vreg-aligned partial sums: (TF, T) -> (TF//8, 8, T), sum axis 0
            acc_ref[0] += dd.reshape(TF // 8, 8, T).sum(axis=0)
            acc_ref[1] += qq.reshape(TF // 8, 8, T).sum(axis=0)
        else:
            # TF == F (full-dim single tile), F not a multiple of 8.
            acc_ref[0, 0:1] += dd.sum(axis=0, keepdims=True)
            acc_ref[1, 0:1] += qq.sum(axis=0, keepdims=True)

        @pl.when(t == nt - 1)
        def _():
            num_ref[0, 0] = acc_ref[0].sum(axis=0, keepdims=True).sum(
                axis=1, keepdims=True)
            den_ref[0, 0] = acc_ref[1].sum(axis=0, keepdims=True).sum(
                axis=1, keepdims=True)

    return kernel


def spectral_convergence_loss(pred_spec, target_spec):
    """Pallas implementation of SpectralConvergenceLoss.forward."""
    # glue: complex -> magnitude (matches torch.is_complex branch)
    pred = jnp.abs(pred_spec) if jnp.iscomplexobj(pred_spec) else pred_spec
    targ = jnp.abs(target_spec) if jnp.iscomplexobj(target_spec) else target_spec

    assert pred.shape == targ.shape and pred.ndim >= 2
    F, T = pred.shape[-2], pred.shape[-1]
    lead = pred.shape[:-2]
    B = int(np.prod(lead)) if lead else 1

    pred3 = pred.reshape(B, F, T)
    targ3 = targ.reshape(B, F, T)

    # --- tile sizing: biggest row tile such that 2 inputs x 2 pipeline
    #     buffers stay inside a conservative VMEM budget (safe on v5e/v6e/v7x).
    INPUT_BUF_BUDGET = 24 * 1024 * 1024
    bytes_per_row = 2 * T * (pred3.dtype.itemsize + targ3.dtype.itemsize)
    max_rows = max(8, INPUT_BUF_BUDGET // max(bytes_per_row, 1))
    tf_cap = max(8, (max_rows // 8) * 8)
    # TODO(synk): for extremely wide T (8-row tiles still over budget), also
    # tile the lane axis; not needed for spectrogram-sized inputs.
    if F <= tf_cap:
        TF = F                      # full-F block: single row tile, no mask
    else:
        TF = tf_cap                 # multiple of 8
    n_tiles = pl.cdiv(F, TF)

    # --- megacore: with a single sample but several row tiles, split the
    #     row-tile range over a second "parallel" axis (both v7x TCs busy).
    C = 2 if (B == 1 and n_tiles >= 2) else 1
    tpc = pl.cdiv(n_tiles, C)       # row tiles per chunk
    needs_mask = (F % TF != 0) or (C * tpc != n_tiles)

    def in_map(b, c, t):
        # clamp so a trailing empty chunk-tile never indexes a fully-OOB block
        return (b, jnp.minimum(c * tpc + t, n_tiles - 1), 0)

    kernel = _make_kernel(F, TF, tpc, needs_mask)

    num_sq, den_sq = pl.pallas_call(
        kernel,
        out_shape=(jax.ShapeDtypeStruct((B, C, 1, 1), jnp.float32),
                   jax.ShapeDtypeStruct((B, C, 1, 1), jnp.float32)),
        grid_spec=pltpu.PrefetchScalarGridSpec(
            num_scalar_prefetch=0,
            grid=(B, C, tpc),
            in_specs=[
                pl.BlockSpec((1, TF, T), in_map),
                pl.BlockSpec((1, TF, T), in_map),
            ],
            out_specs=[
                pl.BlockSpec((1, 1, 1, 1), lambda b, c, t: (b, c, 0, 0)),
                pl.BlockSpec((1, 1, 1, 1), lambda b, c, t: (b, c, 0, 0)),
            ],
            scratch_shapes=[pltpu.VMEM((2, 8, T), jnp.float32)],
        ),
        compiler_params=pltpu.CompilerParams(
            dimension_semantics=("parallel", "parallel", "arbitrary"),
            vmem_limit_bytes=40 * 1024 * 1024),
    )(pred3, targ3)

    # glue: combine per-chunk partials, sqrt/clamp/ratio, mean over B scalars.
    num = jnp.sqrt(jnp.sum(num_sq.reshape(B, C), axis=1))
    den = jnp.maximum(jnp.sqrt(jnp.sum(den_sq.reshape(B, C), axis=1)),
                      jnp.float32(1e-7))
    return jnp.mean(num / den)


def reference(pred_spec, target_spec):
    """Pure-JAX reference matching the PyTorch module."""
    pm = jnp.abs(pred_spec) if jnp.iscomplexobj(pred_spec) else pred_spec
    tm = jnp.abs(target_spec) if jnp.iscomplexobj(target_spec) else target_spec
    pm = pm.astype(jnp.float32)
    tm = tm.astype(jnp.float32)
    num = jnp.sqrt(jnp.sum((tm - pm) ** 2, axis=(-2, -1)))
    den = jnp.maximum(jnp.sqrt(jnp.sum(tm * tm, axis=(-2, -1))), 1e-7)
    return jnp.mean(num / den)


if __name__ == "__main__":
    key = jax.random.PRNGKey(0)
    k1, k2 = jax.random.split(key)

    # spectrogram magnitudes: (batch, freq_bins, time_frames)
    B, F, T = 2, 200, 200
    target = jnp.abs(jax.random.normal(k1, (B, F, T), jnp.float32))
    pred = jnp.abs(target + 0.1 * jax.random.normal(k2, (B, F, T), jnp.float32))

    out = jax.block_until_ready(spectral_convergence_loss(pred, target))
    ref = jax.block_until_ready(reference(pred, target))
    np.testing.assert_allclose(np.asarray(out), np.asarray(ref),
                               rtol=1e-4, atol=1e-6)

    print("KERNEL_OK")
</pallas_src>

<mosaic_0001>
module attributes {stable_mosaic.version = 11 : i64} {
  func.func @kernel(%arg0: i32, %arg1: i32, %arg2: i32, %arg3: memref<1x200x200xf32, #tpu.memory_space<vmem>>, %arg4: memref<1x200x200xf32, #tpu.memory_space<vmem>>, %arg5: memref<1x1x1x1xf32, #tpu.memory_space<vmem>>, %arg6: memref<1x1x1x1xf32, #tpu.memory_space<vmem>>, %arg7: memref<2x8x200xf32, #tpu.memory_space<vmem>>) attributes {dimension_semantics = [#tpu.dimension_semantics<parallel>, #tpu.dimension_semantics<parallel>, #tpu.dimension_semantics<arbitrary>], iteration_bounds = array<i64: 2, 1, 1>, scalar_prefetch = 0 : i64, scratch_operands = 1 : i64, tpu.core_type = #tpu.core_type<tc>, window_params = [{transform_indices = @transform_0, window_bounds = array<i64: 1, 200, 200>}, {transform_indices = @transform_1, window_bounds = array<i64: 1, 200, 200>}, {transform_indices = @transform_2, window_bounds = array<i64: 1, 1, 1, 1>}, {transform_indices = @transform_3, window_bounds = array<i64: 1, 1, 1, 1>}]} {
    %c0_i32 = arith.constant 0 : i32
    %0 = arith.cmpi eq, %arg2, %c0_i32 : i32
    %1 = arith.extui %0 : i1 to i32
    %c0_i32_0 = arith.constant 0 : i32
    %2 = arith.cmpi ne, %1, %c0_i32_0 : i32
    scf.if %2 {
      %cst_20 = arith.constant 0.000000e+00 : f32
      %29 = vector.broadcast %cst_20 : f32 to vector<2x8x200xf32>
      %c0_21 = arith.constant 0 : index
      %c0_22 = arith.constant 0 : index
      %c0_23 = arith.constant 0 : index
      %30 = vector.load %arg7[%c0_21, %c0_22, %c0_23] : memref<2x8x200xf32, #tpu.memory_space<vmem>>, vector<2x8x200xf32>
      tpu.vector_store %arg7[%c0_21, %c0_22, %c0_23], %29 {strides = array<i32>} : memref<2x8x200xf32, #tpu.memory_space<vmem>>, vector<2x8x200xf32>,
    } else {
    }
    %c0 = arith.constant 0 : index
    %c0_1 = arith.constant 0 : index
    %c0_2 = arith.constant 0 : index
    %3 = vector.load %arg3[%c0, %c0_1, %c0_2] : memref<1x200x200xf32, #tpu.memory_space<vmem>>, vector<1x200x200xf32>
    %4 = vector.shape_cast %3 : vector<1x200x200xf32> to vector<200x200xf32>
    %c0_3 = arith.constant 0 : index
    %c0_4 = arith.constant 0 : index
    %c0_5 = arith.constant 0 : index
    %5 = vector.load %arg4[%c0_3, %c0_4, %c0_5] : memref<1x200x200xf32, #tpu.memory_space<vmem>>, vector<1x200x200xf32>
    %6 = vector.shape_cast %5 : vector<1x200x200xf32> to vector<200x200xf32>
    %7 = arith.subf %6, %4 : vector<200x200xf32>
    %8 = arith.mulf %7, %7 : vector<200x200xf32>
    %9 = arith.mulf %6, %6 : vector<200x200xf32>
    %c0_6 = arith.constant 0 : index
    %c0_7 = arith.constant 0 : index
    %c0_8 = arith.constant 0 : index
    %10 = vector.load %arg7[%c0_6, %c0_7, %c0_8] : memref<2x8x200xf32, #tpu.memory_space<vmem>>, vector<1x8x200xf32>
    %11 = vector.shape_cast %10 : vector<1x8x200xf32> to vector<8x200xf32>
    %12 = vector.shape_cast %8 : vector<200x200xf32> to vector<25x8x200xf32>
    %cst = arith.constant dense<0.000000e+00> : vector<8x200xf32>
    %13 = vector.multi_reduction <add>, %12, %cst [0] : vector<25x8x200xf32> to vector<8x200xf32>
    %14 = arith.addf %11, %13 : vector<8x200xf32>
    %c0_9 = arith.constant 0 : index
    %c0_10 = arith.constant 0 : index
    %c0_11 = arith.constant 0 : index
    %15 = vector.load %arg7[%c0_9, %c0_10, %c0_11] : memref<2x8x200xf32, #tpu.memory_space<vmem>>, vector<1x8x200xf32>
    %16 = vector.shape_cast %15 : vector<1x8x200xf32> to vector<8x200xf32>
    %17 = vector.shape_cast %14 : vector<8x200xf32> to vector<1x8x200xf32>
    tpu.vector_store %arg7[%c0_9, %c0_10, %c0_11], %17 {strides = array<i32>} : memref<2x8x200xf32, #tpu.memory_space<vmem>>, vector<1x8x200xf32>,
    %c1 = arith.constant 1 : index
    %c0_12 = arith.constant 0 : index
    %c0_13 = arith.constant 0 : index
    %18 = vector.load %arg7[%c1, %c0_12, %c0_13] : memref<2x8x200xf32, #tpu.memory_space<vmem>>, vector<1x8x200xf32>
    %19 = vector.shape_cast %18 : vector<1x8x200xf32> to vector<8x200xf32>
    %20 = vector.shape_cast %9 : vector<200x200xf32> to vector<25x8x200xf32>
    %cst_14 = arith.constant dense<0.000000e+00> : vector<8x200xf32>
    %21 = vector.multi_reduction <add>, %20, %cst_14 [0] : vector<25x8x200xf32> to vector<8x200xf32>
    %22 = arith.addf %19, %21 : vector<8x200xf32>
    %c1_15 = arith.constant 1 : index
    %c0_16 = arith.constant 0 : index
    %c0_17 = arith.constant 0 : index
    %23 = vector.load %arg7[%c1_15, %c0_16, %c0_17] : memref<2x8x200xf32, #tpu.memory_space<vmem>>, vector<1x8x200xf32>
    %24 = vector.shape_cast %23 : vector<1x8x200xf32> to vector<8x200xf32>
    %25 = vector.shape_cast %22 : vector<8x200xf32> to vector<1x8x200xf32>
    tpu.vector_store %arg7[%c1_15, %c0_16, %c0_17], %25 {strides = array<i32>} : memref<2x8x200xf32, #tpu.memory_space<vmem>>, vector<1x8x200xf32>,
    %c0_i32_18 = arith.constant 0 : i32
    %26 = arith.cmpi eq, %arg2, %c0_i32_18 : i32
    %27 = arith.extui %26 : i1 to i32
    %c0_i32_19 = arith.constant 0 : i32
    %28 = arith.cmpi ne, %27, %c0_i32_19 : i32
    scf.if %28 {
      %c0_20 = arith.constant 0 : index
      %c0_21 = arith.constant 0 : index
      %c0_22 = arith.constant 0 : index
      %29 = vector.load %arg7[%c0_20, %c0_21, %c0_22] : memref<2x8x200xf32, #tpu.memory_space<vmem>>, vector<1x8x200xf32>
      %30 = vector.shape_cast %29 : vector<1x8x200xf32> to vector<8x200xf32>
      %cst_23 = arith.constant dense<0.000000e+00> : vector<200xf32>
      %31 = vector.multi_reduction <add>, %30, %cst_23 [0] : vector<8x200xf32> to vector<200xf32>
      %32 = vector.shape_cast %31 : vector<200xf32> to vector<1x200xf32>
      %cst_24 = arith.constant dense<0.000000e+00> : vector<1xf32>
      %33 = vector.multi_reduction <add>, %32, %cst_24 [1] : vector<1x200xf32> to vector<1xf32>
      %34 = vector.shape_cast %33 : vector<1xf32> to vector<1x1xf32>
      %c0_25 = arith.constant 0 : index
      %c0_26 = arith.constant 0 : index
      %c0_27 = arith.constant 0 : index
      %c0_28 = arith.constant 0 : index
      %35 = vector.load %arg5[%c0_25, %c0_26, %c0_27, %c0_28] : memref<1x1x1x1xf32, #tpu.memory_space<vmem>>, vector<1x1x1x1xf32>
      %36 = vector.shape_cast %35 : vector<1x1x1x1xf32> to vector<1x1xf32>
      %37 = vector.shape_cast %34 : vector<1x1xf32> to vector<1x1x1x1xf32>
      tpu.vector_store %arg5[%c0_25, %c0_26, %c0_27, %c0_28], %37 {strides = array<i32>} : memref<1x1x1x1xf32, #tpu.memory_space<vmem>>, vector<1x1x1x1xf32>,
      %c1_29 = arith.constant 1 : index
      %c0_30 = arith.constant 0 : index
      %c0_31 = arith.constant 0 : index
      %38 = vector.load %arg7[%c1_29, %c0_30, %c0_31] : memref<2x8x200xf32, #tpu.memory_space<vmem>>, vector<1x8x200xf32>
      %39 = vector.shape_cast %38 : vector<1x8x200xf32> to vector<8x200xf32>
      %cst_32 = arith.constant dense<0.000000e+00> : vector<200xf32>
      %40 = vector.multi_reduction <add>, %39, %cst_32 [0] : vector<8x200xf32> to vector<200xf32>
      %41 = vector.shape_cast %40 : vector<200xf32> to vector<1x200xf32>
      %cst_33 = arith.constant dense<0.000000e+00> : vector<1xf32>
      %42 = vector.multi_reduction <add>, %41, %cst_33 [1] : vector<1x200xf32> to vector<1xf32>
      %43 = vector.shape_cast %42 : vector<1xf32> to vector<1x1xf32>
      %c0_34 = arith.constant 0 : index
      %c0_35 = arith.constant 0 : index
      %c0_36 = arith.constant 0 : index
      %c0_37 = arith.constant 0 : index
      %44 = vector.load %arg6[%c0_34, %c0_35, %c0_36, %c0_37] : memref<1x1x1x1xf32, #tpu.memory_space<vmem>>, vector<1x1x1x1xf32>
      %45 = vector.shape_cast %44 : vector<1x1x1x1xf32> to vector<1x1xf32>
      %46 = vector.shape_cast %43 : vector<1x1xf32> to vector<1x1x1x1xf32>
      tpu.vector_store %arg6[%c0_34, %c0_35, %c0_36, %c0_37], %46 {strides = array<i32>} : memref<1x1x1x1xf32, #tpu.memory_space<vmem>>, vector<1x1x1x1xf32>,
    } else {
    }
    return
  }
  func.func @transform_0(%arg0: i32, %arg1: i32, %arg2: i32) -> (i32, i32, i32) {
    %c1_i32 = arith.constant 1 : i32
    %0 = arith.muli %arg1, %c1_i32 : i32
    %1 = arith.addi %0, %arg2 : i32
    %c0_i32 = arith.constant 0 : i32
    %2 = arith.minsi %1, %c0_i32 : i32
    %c0_i32_0 = arith.constant 0 : i32
    %c0_i32_1 = arith.constant 0 : i32
    return %arg0, %2, %c0_i32_0 : i32, i32, i32
  }
  func.func @transform_1(%arg0: i32, %arg1: i32, %arg2: i32) -> (i32, i32, i32) {
    %c1_i32 = arith.constant 1 : i32
    %0 = arith.muli %arg1, %c1_i32 : i32
    %1 = arith.addi %0, %arg2 : i32
    %c0_i32 = arith.constant 0 : i32
    %2 = arith.minsi %1, %c0_i32 : i32
    %c0_i32_0 = arith.constant 0 : i32
    %c0_i32_1 = arith.constant 0 : i32
    return %arg0, %2, %c0_i32_0 : i32, i32, i32
  }
  func.func @transform_2(%arg0: i32, %arg1: i32, %arg2: i32) -> (i32, i32, i32, i32) {
    %c0_i32 = arith.constant 0 : i32
    %c0_i32_0 = arith.constant 0 : i32
    %c0_i32_1 = arith.constant 0 : i32
    return %arg0, %arg1, %c0_i32, %c0_i32_0 : i32, i32, i32, i32
  }
  func.func @transform_3(%arg0: i32, %arg1: i32, %arg2: i32) -> (i32, i32, i32, i32) {
    %c0_i32 = arith.constant 0 : i32
    %c0_i32_0 = arith.constant 0 : i32
    %c0_i32_1 = arith.constant 0 : i32
    return %arg0, %arg1, %c0_i32, %c0_i32_0 : i32, i32, i32, i32
  }
}

</mosaic_0001>

<bundles_post_ra>
// kernel: tpu_custom_call.1
= control target key start
LH: loop header
LB: loop body
LE: loop exit
PB: predicated region body
PF: predicated region fallthrough
CT: control target
= control target key end

     0   :  { %9 = vsyncpa [#allocation4], 0  ;;  %s1868_s0 = inlined_call_operand.hbm [shape: f32[2,200,200], index: 0, kind: input, shape index: {}]   ;;  %s1869_s1 = inlined_call_operand.hbm [shape: f32[2,200,200], index: 1, kind: input, shape index: {}]   ;;  %s1870_s2 = inlined_call_operand.vmem [shape: f32[2,1,1,1], index: 2, kind: output, shape index: {0}]   ;;  %s1871_s3 = inlined_call_operand.vmem [shape: f32[2,1,1,1], index: 3, kind: output, shape index: {1}]  }
   0x1   :  { %11 = vsyncpa [#allocation4 + $0x1], 0 }
   0x2   :  { %12 = vsyncpa [#allocation6], 0 }
   0x3   :  { %14 = vsyncpa [#allocation6 + $0x1], 0  ;;  %s1134_s12 = smov 0   ;;  %s1136_s13 = smov 0  }
   0x4   :  { %s1138_s14 = smov 0   ;;  %s1140_s15 = smov 0  }
   0x5   :  { %s1142_s16 = smov 0   ;;  %s1144_s17 = smov 0  }
   0x6 LB: > { %s918_s18 = sadd.s32 4294967295, %s1109_s17   ;;  %s39_s19 = sadd.s32 1, %s1105_s16  ;;  %s1109_s17 = sphi %s1144_s17, %s20_s17   ;;  %s1105_s16 = sphi %s1142_s16, %s2007_s16   ;;  %s1101_s15 = sphi %s1140_s15, %s2006_s15   ;;  %s1097_s14 = sphi %s1138_s14, %s2005_s14   ;;  %s1093_s13 = sphi %s1136_s13, %s2004_s13   ;;  %s1089_s12 = sphi %s1134_s12, %s2003_s12  }
   0x7   : > { %p41_p0 = scmp.ge.s32.totalorder %s39_s19, 2  ;;  %s54_s20 = sadd.s32 1, %s1097_s14 }
   0x8   : > { %p61_p1 = scmp.ne.s32.totalorder %s1097_s14, %s1093_s13  ;;  %p62_p2 = scmp.eq.s32.totalorder %s1109_s17, 0 }
   0x9   : > { %s2009_s19 = smov (%p41_p0, %s39_s19), 0  ;;  %p67_p4 = scmp.ne.s32.totalorder %s1093_s13, %s1089_s12 }
   0xa   : > { %p63_p3 = por %p62_p2, %p61_p1  ;;  %s49_s21 = ssub.s32 %s1105_s16, %s2009_s19 }
   0xb   : > { %p68_p5 = scmp.eq.s32.totalorder %s918_s18, 0  ;;  %p52_p6 = scmp.eq.s32.totalorder %s49_s21, 0 }
   0xc   : > { %p943_p8 = scmp.lt.s32.totalorder %s1109_s17, 2  ;;  %s1182_s24 = sand.u32 1, %s1097_s14  }
   0xd   : > { %p1173_p7 = por %p68_p5, %p67_p4  ;;  %s928_s25 = smul.u32 400, %s1105_s16 }
   0xe   : > { %s1179_s23 = scalar_select %p52_p6, %s1097_s14, %s54_s20  }
   0xf   : > { %s927_s26 = smul.u32 400, %s1182_s24  ;;  %s196_s29 = scalar_lea.hbm %s1868_s0, %s928_s25 }
  0x10   : > { %p1189_p9 = pnand %p943_p8, %p63_p3  ;;  %s197_s4 = sshll.u32 %s196_s29, 4  ;;  %s198_s4 = int_to_ptr.hbm [resolvable:$true] %s197_s4 }
  0x11   : > { %s185_s5 = scalar_lea.vmem [#allocation3], %s927_s26  ;;  %s182_s7 = scalar_lea.sflag [#allocation4], %s1182_s24 }
  0x12   : > { %s199_s6 = sshll.u32 %s185_s5, 4  ;;  %s1111_s8 = smov 256   ;;  %s200_s6 = int_to_ptr.vmem [resolvable:$true] %s199_s6 }
  0x13   : > { %s1112_s9 = smov 16   ;;  %p924_p10 = scmp.ge.s32.totalorder %s1109_s17, 1 }
  0x14   : > { %939 = dma.hbm_to_vmem [thread:$0]  (!%p1189_p9), %s198_s4, 6400, %s200_s6, %s182_s7, %s1111_s8, %s1111_s8, %s1112_s9  }
  0x15   : > { %p235_p11 = scmp.lt.s32.totalorder %s1109_s17, 3  ;;  %s224_s12 = scalar_lea.hbm %s1869_s1, %s928_s25 }
  0x16   : > { %s225_s18 = sshll.u32 %s224_s12, 4  ;;  %s213_s20 = scalar_lea.vmem [#allocation5], %s927_s26  ;;  %s226_s18 = int_to_ptr.hbm [resolvable:$true] %s225_s18 }
  0x17   : > { %p236_p12 = pnand %p924_p10, %p235_p11  ;;  %s227_s21 = sshll.u32 %s213_s20, 4  ;;  %s228_s21 = int_to_ptr.vmem [resolvable:$true] %s227_s21 }
  0x18   : > { %s210_s27 = scalar_lea.sflag [#allocation6], %s1182_s24 }
  0x19   : > { %942 = dma.hbm_to_vmem [thread:$0]  (!%p1189_p9), %s226_s18, 6400, %s228_s21, %s210_s27, %s1111_s8, %s1111_s8, %s1112_s9  }
  0x1a   : > { %239 = sbr.rel (%p236_p12) target bundleno = 293 (0x125), region = 28 }
  0x1f   : > { %s241_s28 = sand.u32 1, %s1093_s13  }
  0x20   : > { %s931_s29 = smul.u32 400, %s241_s28  ;;  %s242_s4 = scalar_lea.sflag [#allocation4], %s241_s28 }
  0x22   : > { %s1205_s5 = scalar_lea.vmem [#allocation3], %s931_s29 }
  0x23   : > { %1080 = dma.done.wait (%p1173_p7), %s242_s4, 6400  }
  0x24   : > { %1082 = vsyncadd (%p1173_p7), %s242_s4, 4294960896  ;;  %s252_s25 = scalar_lea.sflag [#allocation6], %s241_s28  ;;  %s1211_s26 = scalar_lea.vmem [#allocation5], %s931_s29 }
  0x25   : > { %1084 = dma.done.wait (%p1173_p7), %s252_s25, 6400  }
  0x26   : > { %1086 = vsyncadd (%p1173_p7), %s252_s25, 4294960896  ;;  %vm316_vm0 = vcmask 588800   ;;  %v1113_v0 = vmov 0.0   ;;  %v320_v1 = vld [vmem:[%s1205_s5] sm:$0xff]  ;;  %v321_v2 = vld [vmem:[%s1205_s5 + $0x8] sm:$0xff]  ;;  %p299_p13 = scmp.lt.s32.totalorder %s1101_s15, 1 }
  0x27   : > { %317 = vst.msk [vmem:[#allocation2 + $0x8] sm:$0xff] %vm316_vm0, %v1113_v0  ;;  %v322_v3 = vld [vmem:[%s1205_s5 + $0x10] sm:$0xff]  ;;  %v1223_v4 = vld [vmem:[%s1211_s26] sm:$0xff]  ;;  %v323_v5 = vld [vmem:[%s1205_s5 + $0x18] sm:$0xff]  ;;  %vm752_vm1 = vcmask 0  }
  0x28   : > { %319 = vst.msk [vmem:[#allocation2 + $0x18] sm:$0xff] %vm316_vm0, %v1113_v0  ;;  %v324_v6 = vld [vmem:[%s1205_s5 + $0x20] sm:$0xff]  ;;  %v325_v7 = vld [vmem:[%s1205_s5 + $0x28] sm:$0xff]  ;;  %v326_v9 = vld [vmem:[%s1205_s5 + $0x30] sm:$0xff]  ;;  %v420_v19 = vsub.f32 %v1223_v4, %v320_v1  ;;  %s2011_s15 = smov (!%p299_p13, %s1101_s15), 1 }
  0x29   : > { %1915 = vst [vmem:[#allocation9_spill] sm:$0xff] %v1223_v4  ;;  %v371_v8 = vld [vmem:[%s1211_s26 + $0x8] sm:$0xff]  ;;  %v327_v10 = vld [vmem:[%s1205_s5 + $0x38] sm:$0xff]  ;;  %v328_v11 = vld [vmem:[%s1205_s5 + $0x40] sm:$0xff]  ;;  %s304_s30 = scalar_lea.vmem %s1870_s2, %s2011_s15  ;;  %s310_s8 = scalar_lea.vmem %s1871_s3, %s2011_s15 }
  0x2a   : > { %v1233_v12 = vld [vmem:[%s1211_s26 + $0x10] sm:$0xff]  ;;  %v329_v13 = vld [vmem:[%s1205_s5 + $0x48] sm:$0xff]  ;;  %v331_v15 = vld [vmem:[%s1205_s5 + $0x58] sm:$0xff]  ;;  %v421_v26 = vsub.f32 %v371_v8, %v321_v2  ;;  %v1288_v43 = vmul.f32 %v371_v8, %v371_v8  ;;  %v1311_v53 = vmul.f32 %v420_v19, %v420_v19 }
  0x2b   : > { %1916 = vst [vmem:[#allocation10_spill] sm:$0xff] %v1233_v12  ;;  %v330_v14 = vld [vmem:[%s1205_s5 + $0x50] sm:$0xff]  ;;  %v1239_v16 = vld [vmem:[%s1211_s26 + $0x18] sm:$0xff]  ;;  %v1242_v17 = vld [vmem:[%s1211_s26 + $0x20] sm:$0xff]  ;;  %v422_v33 = vsub.f32 %v1233_v12, %v322_v3 }
  0x2c   : > { %1917 = vst [vmem:[#allocation11_spill] sm:$0xff] %v1239_v16  ;;  %v1245_v18 = vld [vmem:[%s1211_s26 + $0x28] sm:$0xff]  ;;  %v332_v20 = vld [vmem:[%s1205_s5 + $0x60] sm:$0xff]  ;;  %v334_v22 = vld [vmem:[%s1205_s5 + $0x70] sm:$0xff]  ;;  %v423_v40 = vsub.f32 %v1239_v16, %v323_v5  ;;  %v424_v41 = vsub.f32 %v1242_v17, %v324_v6  ;;  %v1334_v63 = vmul.f32 %v421_v26, %v421_v26 }
  0x2d   : > { %1918 = vst [vmem:[#allocation12_spill] sm:$0xff] %v1242_v17  ;;  %v333_v21 = vld [vmem:[%s1205_s5 + $0x68] sm:$0xff]  ;;  %v1252_v23 = vld [vmem:[%s1211_s26 + $0x30] sm:$0xff]  ;;  %v1255_v24 = vld [vmem:[%s1211_s26 + $0x38] sm:$0xff]  ;;  %v425_v42 = vsub.f32 %v1245_v18, %v325_v7 }
  0x2e   : > { %1919 = vst [vmem:[#allocation13_spill] sm:$0xff] %v1245_v18  ;;  %v1258_v25 = vld [vmem:[%s1211_s26 + $0x40] sm:$0xff]  ;;  %v335_v27 = vld [vmem:[%s1205_s5 + $0x78] sm:$0xff]  ;;  %v337_v29 = vld [vmem:[%s1205_s5 + $0x88] sm:$0xff]  ;;  %v1303_v50 = vsub.f32 %v1252_v23, %v326_v9  ;;  %v1306_v51 = vsub.f32 %v1255_v24, %v327_v10  ;;  %v1357_v10 = vmul.f32 %v422_v33, %v422_v33  ;;  %v1380_v33 = vmul.f32 %v423_v40, %v423_v40 }
  0x2f   : > { %1920 = vst [vmem:[#allocation14_spill] sm:$0xff] %v1252_v23  ;;  %v336_v28 = vld [vmem:[%s1205_s5 + $0x80] sm:$0xff]  ;;  %v1264_v30 = vld [vmem:[%s1211_s26 + $0x48] sm:$0xff]  ;;  %v1267_v31 = vld [vmem:[%s1211_s26 + $0x50] sm:$0xff]  ;;  %v1309_v52 = vsub.f32 %v1258_v25, %v328_v11 }
  0x30   : > { %1921 = vst [vmem:[#allocation15_spill] sm:$0xff] %v1255_v24  ;;  %v1270_v32 = vld [vmem:[%s1211_s26 + $0x58] sm:$0xff]  ;;  %v338_v34 = vld [vmem:[%s1205_s5 + $0x90] sm:$0xff]  ;;  %v340_v36 = vld [vmem:[%s1205_s5 + $0xa0] sm:$0xff]  ;;  %v1326_v60 = vsub.f32 %v1264_v30, %v329_v13  ;;  %v1329_v61 = vsub.f32 %v1267_v31, %v330_v14 }
  0x31   : > { %1922 = vst [vmem:[#allocation16_spill] sm:$0xff] %v1258_v25  ;;  %v339_v35 = vld [vmem:[%s1205_s5 + $0x98] sm:$0xff]  ;;  %v1277_v37 = vld [vmem:[%s1211_s26 + $0x60] sm:$0xff]  ;;  %v1280_v38 = vld [vmem:[%s1211_s26 + $0x68] sm:$0xff]  ;;  %v1332_v62 = vsub.f32 %v1270_v32, %v331_v15 }
  0x32   : > { %1923 = vst [vmem:[#allocation17_spill] sm:$0xff] %v1264_v30  ;;  %v1283_v39 = vld [vmem:[%s1211_s26 + $0x70] sm:$0xff]  ;;  %v341_v44 = vld [vmem:[%s1205_s5 + $0xa8] sm:$0xff]  ;;  %v343_v46 = vld [vmem:[%s1205_s5 + $0xb8] sm:$0xff]  ;;  %v1349_v7 = vsub.f32 %v1277_v37, %v332_v20  ;;  %v1352_v8 = vsub.f32 %v1280_v38, %v333_v21 }
  0x33   : > { %1924 = vst [vmem:[#allocation18_spill] sm:$0xff] %v1267_v31  ;;  %v342_v45 = vld [vmem:[%s1205_s5 + $0xb0] sm:$0xff]  ;;  %v1294_v47 = vld [vmem:[%s1211_s26 + $0x78] sm:$0xff]  ;;  %v1297_v48 = vld [vmem:[%s1211_s26 + $0x80] sm:$0xff]  ;;  %v1355_v9 = vsub.f32 %v1283_v39, %v334_v22 }
  0x34   : > { %1925 = vst [vmem:[#allocation19_spill] sm:$0xff] %v1270_v32  ;;  %v1300_v49 = vld [vmem:[%s1211_s26 + $0x88] sm:$0xff]  ;;  %v344_v54 = vld [vmem:[%s1205_s5 + $0xc0] sm:$0xff]  ;;  %v346_v56 = vld [vmem:[%s1205_s5 + $0xd0] sm:$0xff]  ;;  %v1372_v21 = vsub.f32 %v1294_v47, %v335_v27  ;;  %v1375_v22 = vsub.f32 %v1297_v48, %v336_v28  ;;  %v482_v12 = vmul.f32 %v1349_v7, %v1349_v7 }
  0x35   : > { %1926 = vst [vmem:[#allocation20_spill] sm:$0xff] %v1277_v37  ;;  %v345_v55 = vld [vmem:[%s1205_s5 + $0xc8] sm:$0xff]  ;;  %v1317_v57 = vld [vmem:[%s1211_s26 + $0x90] sm:$0xff]  ;;  %v1320_v58 = vld [vmem:[%s1211_s26 + $0x98] sm:$0xff]  ;;  %v1378_v26 = vsub.f32 %v1300_v49, %v337_v29 }
  0x36   : > { %1927 = vst [vmem:[#allocation21_spill] sm:$0xff] %v1280_v38  ;;  %v1323_v59 = vld [vmem:[%s1211_s26 + $0xa0] sm:$0xff]  ;;  %v347_v0 = vld [vmem:[%s1205_s5 + $0xd8] sm:$0xff]  ;;  %v349_v2 = vld [vmem:[%s1205_s5 + $0xe8] sm:$0xff]  ;;  %v1395_v28 = vsub.f32 %v1317_v57, %v338_v34  ;;  %v1398_v29 = vsub.f32 %v1320_v58, %v339_v35 }
  0x37   : > { %1928 = vst [vmem:[#allocation22_spill] sm:$0xff] %v1283_v39  ;;  %v348_v1 = vld [vmem:[%s1205_s5 + $0xe0] sm:$0xff]  ;;  %v1340_v3 = vld [vmem:[%s1211_s26 + $0xa8] sm:$0xff]  ;;  %v1343_v5 = vld [vmem:[%s1211_s26 + $0xb0] sm:$0xff]  ;;  %v1401_v40 = vsub.f32 %v1323_v59, %v340_v36 }
  0x38   : > { %1929 = vst [vmem:[#allocation23_spill] sm:$0xff] %v1288_v43  ;;  %v1346_v6 = vld [vmem:[%s1211_s26 + $0xb8] sm:$0xff]  ;;  %v350_v11 = vld [vmem:[%s1205_s5 + $0xf0] sm:$0xff]  ;;  %v352_v14 = vld [vmem:[%s1205_s5 + $0x100] sm:$0xff]  ;;  %v1418_v35 = vsub.f32 %v1340_v3, %v341_v44  ;;  %v1421_v36 = vsub.f32 %v1343_v5, %v342_v45 }
  0x39   : > { %1930 = vst [vmem:[#allocation24_spill] sm:$0xff] %v1294_v47  ;;  %v351_v13 = vld [vmem:[%s1205_s5 + $0xf8] sm:$0xff]  ;;  %v1363_v15 = vld [vmem:[%s1211_s26 + $0xc0] sm:$0xff]  ;;  %v1366_v19 = vld [vmem:[%s1211_s26 + $0xc8] sm:$0xff] }
  0x3a   : > { %1931 = vst [vmem:[#allocation25_spill] sm:$0xff] %v1297_v48  ;;  %v1369_v20 = vld [vmem:[%s1211_s26 + $0xd0] sm:$0xff]  ;;  %v353_v39 = vld [vmem:[%s1205_s5 + $0x108] sm:$0xff]  ;;  %v355_v38 = vld [vmem:[%s1205_s5 + $0x118] sm:$0xff]  ;;  %v1403_v48 = vmul.f32 %v424_v41, %v424_v41  ;;  %v1424_v41 = vsub.f32 %v1346_v6, %v343_v46  ;;  %v1442_v45 = vsub.f32 %v1366_v19, %v345_v55  ;;  %v476_v46 = vmul.f32 %v1303_v50, %v1303_v50 }
  0x3b   : > { %1932 = vst [vmem:[#allocation26_spill] sm:$0xff] %v1300_v49  ;;  %v354_v37 = vld [vmem:[%s1205_s5 + $0x110] sm:$0xff]  ;;  %v1386_v31 = vld [vmem:[%s1211_s26 + $0xd8] sm:$0xff]  ;;  %v1389_v32 = vld [vmem:[%s1211_s26 + $0xe0] sm:$0xff]  ;;  %v477_v50 = vmul.f32 %v1306_v51, %v1306_v51  ;;  %v478_v51 = vmul.f32 %v1309_v52, %v1309_v52 }
  0x3c   : > { %1933 = vst [vmem:[#allocation27_spill] sm:$0xff] %v1317_v57  ;;  %v1392_v27 = vld [vmem:[%s1211_s26 + $0xe8] sm:$0xff]  ;;  %v356_v49 = vld [vmem:[%s1205_s5 + $0x120] sm:$0xff]  ;;  %v358_v25 = vld [vmem:[%s1205_s5 + $0x130] sm:$0xff]  ;;  %v1462_v55 = vsub.f32 %v1389_v32, %v348_v1 }
  0x3d   : > { %1934 = vst [vmem:[#allocation28_spill] sm:$0xff] %v1320_v58  ;;  %v357_v47 = vld [vmem:[%s1205_s5 + $0x128] sm:$0xff]  ;;  %v1409_v43 = vld [vmem:[%s1211_s26 + $0xf0] sm:$0xff]  ;;  %v1412_v30 = vld [vmem:[%s1211_s26 + $0xf8] sm:$0xff] }
  0x3e   : > { %1935 = vst [vmem:[#allocation29_spill] sm:$0xff] %v1323_v59  ;;  %v1415_v34 = vld [vmem:[%s1211_s26 + $0x100] sm:$0xff]  ;;  %v475_v59 = vmul.f32 %v425_v42, %v425_v42  ;;  %v359_v57 = vld [vmem:[%s1205_s5 + $0x138] sm:$0xff]  ;;  %v361_v23 = vld [vmem:[%s1205_s5 + $0x148] sm:$0xff]  ;;  %v1445_v42 = vsub.f32 %v1369_v20, %v346_v56  ;;  %v1465_v56 = vsub.f32 %v1392_v27, %v349_v2  ;;  %v1482_v1 = vsub.f32 %v1412_v30, %v351_v13 }
  0x3f   : > { %1936 = vst [vmem:[#allocation30_spill] sm:$0xff] %v1340_v3  ;;  %v360_v58 = vld [vmem:[%s1205_s5 + $0x140] sm:$0xff]  ;;  %v1430_v24 = vld [vmem:[%s1211_s26 + $0x108] sm:$0xff]  ;;  %v1433_v17 = vld [vmem:[%s1211_s26 + $0x110] sm:$0xff]  ;;  %v1439_v3 = vsub.f32 %v1363_v15, %v344_v54  ;;  %v1459_v54 = vsub.f32 %v1386_v31, %v347_v0  ;;  %v1479_v0 = vsub.f32 %v1409_v43, %v350_v11  ;;  %v1485_v2 = vsub.f32 %v1415_v34, %v352_v14 }
  0x40   : > { %1937 = vst [vmem:[#allocation31_spill] sm:$0xff] %v1343_v5  ;;  %v1436_v44 = vld [vmem:[%s1211_s26 + $0x118] sm:$0xff]  ;;  %v1450_v5 = vld [vmem:[%s1211_s26 + $0x120] sm:$0xff]  ;;  %v1456_v18 = vld [vmem:[%s1211_s26 + $0x130] sm:$0xff]  ;;  %v1493_v16 = vsub.f32 %v1430_v24, %v353_v39  ;;  %v1496_v11 = vsub.f32 %v1433_v17, %v354_v37  ;;  %v479_v14 = vmul.f32 %v1326_v60, %v1326_v60  ;;  %v480_v60 = vmul.f32 %v1329_v61, %v1329_v61 }
  0x41   : > { %1938 = vst [vmem:[#allocation32_spill] sm:$0xff] %v1346_v6  ;;  %v1453_v6 = vld [vmem:[%s1211_s26 + $0x128] sm:$0xff]  ;;  %v1499_v13 = vsub.f32 %v1436_v44, %v355_v38  ;;  %v1511_v39 = vsub.f32 %v1450_v5, %v356_v49  ;;  %v1517_v38 = vsub.f32 %v1456_v18, %v358_v25  ;;  %v367_v61 = vld [vmem:[%s1205_s5 + $0x178] sm:$0xff] }
  0x42   : > { %1939 = vst [vmem:[#allocation33_spill] sm:$0xff] %v1363_v15  ;;  %v1473_v15 = vld [vmem:[%s1211_s26 + $0x140] sm:$0xff]  ;;  %v365_v52 = vld [vmem:[%s1205_s5 + $0x168] sm:$0xff]  ;;  %v1514_v37 = vsub.f32 %v1453_v6, %v357_v47  ;;  %v481_v47 = vmul.f32 %v1332_v62, %v1332_v62 }
  0x43   : > { %1940 = vst [vmem:[#allocation34_spill] sm:$0xff] %v1366_v19  ;;  %v1476_v19 = vld [vmem:[%s1211_s26 + $0x148] sm:$0xff]  ;;  %v1532_v49 = vsub.f32 %v1473_v15, %v360_v58  ;;  %v597_v58 = vsel %vm316_vm0, %v1334_v63, 0.0 }
  0x44   : > { %1941 = vst [vmem:[#allocation35_spill] sm:$0xff] %v1369_v20  ;;  %v1470_v20 = vld [vmem:[%s1211_s26 + $0x138] sm:$0xff]  ;;  %v1535_v25 = vsub.f32 %v1476_v19, %v361_v23  ;;  %v600_v23 = vsel %vm316_vm0, %v475_v59, 0.0 }
  0x45   : > { %1942 = vst [vmem:[#allocation36_spill] sm:$0xff] %v1386_v31  ;;  %v364_v31 = vld [vmem:[%s1205_s5 + $0x160] sm:$0xff] }
  0x46   : > { %1943 = vst [vmem:[#allocation37_spill] sm:$0xff] %v1389_v32  ;;  %v362_v32 = vld [vmem:[%s1205_s5 + $0x150] sm:$0xff] }
  0x47   : > { %1944 = vst [vmem:[#allocation38_spill] sm:$0xff] %v1392_v27  ;;  %v363_v27 = vld [vmem:[%s1205_s5 + $0x158] sm:$0xff] }
  0x48   : > { %1945 = vst [vmem:[#allocation39_spill] sm:$0xff] %v1409_v43  ;;  %v1508_v43 = vld [vmem:[%s1211_s26 + $0x158] sm:$0xff] }
  0x49   : > { %1946 = vst [vmem:[#allocation40_spill] sm:$0xff] %v1412_v30  ;;  %v1529_v30 = vsub.f32 %v1470_v20, %v359_v57  ;;  %v572_v57 = vadd.f32 %v1357_v10, %v1311_v53  ;;  %v369_v53 = vld [vmem:[%s1205_s5 + $0x188] sm:$0xff] }
  0x4a   : > { %1947 = vst [vmem:[#allocation41_spill] sm:$0xff] %v1415_v34  ;;  %v1505_v34 = vld [vmem:[%s1211_s26 + $0x150] sm:$0xff]  ;;  %v1563_v10 = vld [vmem:[%s1211_s26 + $0x188] sm:$0xff] }
  0x4b   : > { %1948 = vst [vmem:[#allocation42_spill] sm:$0xff] %v1430_v24  ;;  %v1526_v24 = vld [vmem:[%s1211_s26 + $0x168] sm:$0xff]  ;;  %v462_v62 = vsub.f32 %v1505_v34, %v362_v32  ;;  %v573_v59 = vadd.f32 %v572_v57, %v1403_v48  ;;  %v469_v48 = vsub.f32 %v1563_v10, %v369_v53  ;;  %v497_v57 = vmul.f32 %v1459_v54, %v1459_v54 }
  0x4c   : > { %1949 = vst [vmem:[#allocation43_spill] sm:$0xff] %v1433_v17  ;;  %v366_v17 = vld [vmem:[%s1205_s5 + $0x170] sm:$0xff]  ;;  %v1621_v54 = vmul.f32 %v1485_v2, %v1485_v2 }
  0x4d   : > { %1950 = vst [vmem:[#allocation44_spill] sm:$0xff] %v1436_v44  ;;  %v1523_v44 = vld [vmem:[%s1211_s26 + $0x160] sm:$0xff] }
  0x4e   : > { %1951 = vst [vmem:[#allocation45_spill] sm:$0xff] %v1450_v5  ;;  %v1544_v5 = vld [vmem:[%s1211_s26 + $0x178] sm:$0xff]  ;;  %v464_v63 = vsub.f32 %v1523_v44, %v364_v31  ;;  %v574_v31 = vadd.f32 %v573_v59, %v476_v46  ;;  %v489_v46 = vmul.f32 %v1398_v29, %v1398_v29  ;;  %v495_v29 = vmul.f32 %v1442_v45, %v1442_v45 }
  0x4f   : > { %1952 = vst [vmem:[#allocation46_spill] sm:$0xff] %v1453_v6  ;;  %v463_v6 = vsub.f32 %v1508_v43, %v363_v27  ;;  %v467_v32 = vsub.f32 %v1544_v5, %v367_v61  ;;  %v483_v27 = vmul.f32 %v1352_v8, %v1352_v8  ;;  %v488_v8 = vmul.f32 %v1395_v28, %v1395_v28 }
  0x50   : > { %1953 = vst [vmem:[#allocation47_spill] sm:$0xff] %v1456_v18  ;;  %v1541_v18 = vld [vmem:[%s1211_s26 + $0x170] sm:$0xff]  ;;  %v1615_v45 = vmul.f32 %v1479_v0, %v1479_v0  ;;  %v1634_v0 = vmul.f32 %v1499_v13, %v1499_v13  ;;  %v1646_v59 = vmul.f32 %v1517_v38, %v1517_v38  ;;  %v1651_v13 = vmul.f32 %v1529_v30, %v1529_v30 }
  0x51   : > { %1954 = vst [vmem:[#allocation48_spill] sm:$0xff] %v1470_v20  ;;  %v1555_v20 = vld [vmem:[%s1211_s26 + $0x180] sm:$0xff]  ;;  %v1663_v38 = vmul.f32 %v463_v6, %v463_v6 }
  0x52   : > { %1955 = vst [vmem:[#allocation49_spill] sm:$0xff] %v1473_v15  ;;  %v598_v15 = vsel %vm316_vm0, %v1380_v33, 0.0  ;;  %v465_v33 = vsub.f32 %v1526_v24, %v365_v52  ;;  %v604_v52 = vsel %vm316_vm0, %v479_v14, 0.0  ;;  %v490_v14 = vmul.f32 %v1401_v40, %v1401_v40  ;;  %v1961_v6 = vld [vmem:[#allocation9_spill] sm:$0xff] }
  0x53   : > { %1956 = vst [vmem:[#allocation50_spill] sm:$0xff] %v1476_v19  ;;  %v368_v19 = vld [vmem:[%s1205_s5 + $0x180] sm:$0xff]  ;;  %v599_v4 = vadd.f32 %v598_v15, %v597_v58  ;;  %v484_v58 = vmul.f32 %v1355_v9, %v1355_v9  ;;  %v606_v9 = vsel %vm316_vm0, %v481_v47, 0.0  ;;  %v494_v47 = vmul.f32 %v1439_v3, %v1439_v3 }
  0x54   : > { %1957 = vst [vmem:[#allocation51_spill] sm:$0xff] %v1532_v49  ;;  %v466_v49 = vsub.f32 %v1541_v18, %v366_v17  ;;  %v468_v15 = vsub.f32 %v1555_v20, %v368_v19  ;;  %v486_v17 = vmul.f32 %v1375_v22, %v1375_v22  ;;  %v575_v19 = vadd.f32 %v574_v31, %v478_v51 }
  0x55   : > { %1958 = vst [vmem:[#allocation52_spill] sm:$0xff] %v1535_v25  ;;  %v602_v25 = vsel %vm316_vm0, %v477_v50, 0.0  ;;  %v601_v7 = vadd.f32 %v600_v23, %v599_v4  ;;  %v485_v50 = vmul.f32 %v1372_v21, %v1372_v21  ;;  %v487_v4 = vmul.f32 %v1378_v26, %v1378_v26 }
  0x56   : > { %v491_v21 = vmul.f32 %v1418_v35, %v1418_v35  ;;  %v493_v26 = vmul.f32 %v1424_v41, %v1424_v41  ;;  %v576_v28 = vadd.f32 %v575_v19, %v480_v60  ;;  %v608_v51 = vsel %vm316_vm0, %v483_v27, 0.0 }
  0x57   : > { %v603_v61 = vadd.f32 %v602_v25, %v601_v7  ;;  %v492_v25 = vmul.f32 %v1421_v36, %v1421_v36  ;;  %v496_v40 = vmul.f32 %v1445_v42, %v1445_v42  ;;  %v1608_v36 = vmul.f32 %v1462_v55, %v1462_v55 }
  0x58   : > { %v577_v41 = vadd.f32 %v576_v28, %v482_v12  ;;  %v610_v60 = vsel %vm316_vm0, %v485_v50, 0.0  ;;  %v499_v3 = vmul.f32 %v1465_v56, %v1465_v56  ;;  %v501_v42 = vmul.f32 %v1482_v1, %v1482_v1 }
  0x59   : > { %v605_v22 = vadd.f32 %v604_v52, %v603_v61  ;;  %v1625_v12 = vmul.f32 %v1493_v16, %v1493_v16  ;;  %v612_v53 = vsel %vm316_vm0, %v487_v4, 0.0  ;;  %v1630_v56 = vmul.f32 %v1496_v11, %v1496_v11 }
  0x5a   : > { %v578_v55 = vadd.f32 %v577_v41, %v484_v58  ;;  %v1638_v1 = vmul.f32 %v1511_v39, %v1511_v39  ;;  %v1642_v16 = vmul.f32 %v1514_v37, %v1514_v37  ;;  %v614_v11 = vsel %vm316_vm0, %v489_v46, 0.0 }
  0x5b   : > { %v607_v35 = vadd.f32 %v606_v9, %v605_v22  ;;  %v1959_v7 = vld [vmem:[#allocation51_spill] sm:$0xff]  ;;  %v1661_v52 = vmul.f32 %v462_v62, %v462_v62  ;;  %v1666_v61 = vmul.f32 %v464_v63, %v464_v63  ;;  %v1668_v30 = vmul.f32 %v465_v33, %v465_v33 }
  0x5c   : > { %v579_v27 = vadd.f32 %v578_v55, %v486_v17  ;;  %v1655_v39 = vmul.f32 %v1959_v7, %v1959_v7  ;;  %v1960_v58 = vld [vmem:[#allocation52_spill] sm:$0xff]  ;;  %v616_v17 = vsel %vm316_vm0, %v491_v21, 0.0  ;;  %v1670_v4 = vmul.f32 %v466_v49, %v466_v49  ;;  %v1963_v21 = vld [vmem:[#allocation11_spill] sm:$0xff] }
  0x5d   : > { %v609_v23 = vadd.f32 %v608_v51, %v607_v35  ;;  %v1659_v31 = vmul.f32 %v1960_v58, %v1960_v58  ;;  %v1672_v9 = vmul.f32 %v467_v32, %v467_v32  ;;  %v1674_v46 = vmul.f32 %v468_v15, %v468_v15  ;;  %v1962_v51 = vld [vmem:[#allocation10_spill] sm:$0xff]  ;;  %v1964_v15 = vld [vmem:[#allocation13_spill] sm:$0xff]  ;;  %v1966_v55 = vld [vmem:[#allocation15_spill] sm:$0xff] }
  0x5e   : > { %v580_v50 = vadd.f32 %v579_v27, %v488_v8  ;;  %v618_v62 = vsel %vm316_vm0, %v493_v26, 0.0  ;;  %v520_v8 = vmul.f32 %v1961_v6, %v1961_v6  ;;  %v522_v63 = vmul.f32 %v1962_v51, %v1962_v51 }
  0x5f   : > { %v611_v2 = vadd.f32 %v610_v60, %v609_v23  ;;  %v523_v33 = vmul.f32 %v1963_v21, %v1963_v21  ;;  %v1683_v49 = vmul.f32 %v469_v48, %v469_v48  ;;  %v620_v32 = vsel %vm316_vm0, %v495_v29, 0.0  ;;  %v1965_v60 = vld [vmem:[#allocation12_spill] sm:$0xff]  ;;  %v1967_v48 = vld [vmem:[#allocation14_spill] sm:$0xff] }
  0x60   : > { %v581_v22 = vadd.f32 %v580_v50, %v490_v14  ;;  %v525_v14 = vmul.f32 %v1964_v15, %v1964_v15  ;;  %v622_v26 = vsel %vm316_vm0, %v497_v57, 0.0  ;;  %v524_v23 = vmul.f32 %v1965_v60, %v1965_v60  ;;  %v1973_v15 = vld [vmem:[#allocation21_spill] sm:$0xff] }
  0x61   : > { %v613_v37 = vadd.f32 %v612_v53, %v611_v2  ;;  %v527_v53 = vmul.f32 %v1966_v55, %v1966_v55  ;;  %v624_v27 = vsel %vm316_vm0, %v499_v3, 0.0  ;;  %v653_v58 = vadd.f32 %v522_v63, %v520_v8  ;;  %v1974_v55 = vld [vmem:[#allocation20_spill] sm:$0xff] }
  0x62   : > { %v582_v35 = vadd.f32 %v581_v22, %v492_v25  ;;  %v526_v25 = vmul.f32 %v1967_v48, %v1967_v48  ;;  %v678_v50 = vsel %vm316_vm0, %v523_v33, 0.0  ;;  %v680_v3 = vsel %vm316_vm0, %v525_v14, 0.0 }
  0x63   : > { %v615_v19 = vadd.f32 %v614_v11, %v613_v37  ;;  %v1968_v11 = vld [vmem:[#allocation17_spill] sm:$0xff]  ;;  %v1969_v37 = vld [vmem:[#allocation23_spill] sm:$0xff]  ;;  %v654_v51 = vadd.f32 %v653_v58, %v524_v23  ;;  %v682_v21 = vsel %vm316_vm0, %v527_v53, 0.0  ;;  %v626_v63 = vsel %vm316_vm0, %v501_v42, 0.0 }
  0x64   : > { %v583_v2 = vadd.f32 %v582_v35, %v494_v47  ;;  %v529_v29 = vmul.f32 %v1968_v11, %v1968_v11  ;;  %v677_v57 = vsel %vm316_vm0, %v1969_v37, 0.0  ;;  %v1972_v35 = vld [vmem:[#allocation18_spill] sm:$0xff]  ;;  %v628_v23 = vsel %vm316_vm0, %v1625_v12, 0.0 }
  0x65   : > { %v617_v28 = vadd.f32 %v616_v17, %v615_v19  ;;  %v1970_v19 = vld [vmem:[#allocation16_spill] sm:$0xff]  ;;  %v679_v47 = vadd.f32 %v678_v50, %v677_v57  ;;  %v655_v14 = vadd.f32 %v654_v51, %v526_v25  ;;  %v1977_v37 = vld [vmem:[#allocation26_spill] sm:$0xff] }
  0x66   : > { %v584_v17 = vadd.f32 %v583_v2, %v496_v40  ;;  %v528_v22 = vmul.f32 %v1970_v19, %v1970_v19  ;;  %v530_v40 = vmul.f32 %v1972_v35, %v1972_v35  ;;  %v1975_v2 = vld [vmem:[#allocation24_spill] sm:$0xff]  ;;  %v537_v57 = vmul.f32 %v1977_v37, %v1977_v37 }
  0x67   : > { %v619_v41 = vadd.f32 %v618_v62, %v617_v28  ;;  %v1971_v28 = vld [vmem:[#allocation19_spill] sm:$0xff]  ;;  %v681_v33 = vadd.f32 %v680_v3, %v679_v47  ;;  %v535_v48 = vmul.f32 %v1975_v2, %v1975_v2  ;;  %v638_v2 = vsel %vm316_vm0, %v1663_v38, 0.0 }
  0x68   : > { %v531_v6 = vmul.f32 %v1971_v28, %v1971_v28  ;;  %v585_v8 = vadd.f32 %v584_v17, %v1608_v36  ;;  %v532_v36 = vmul.f32 %v1974_v55, %v1974_v55 }
  0x69   : > { %v621_v7 = vadd.f32 %v620_v32, %v619_v41  ;;  %v533_v41 = vmul.f32 %v1973_v15, %v1973_v15  ;;  %v683_v42 = vadd.f32 %v682_v21, %v681_v33  ;;  %v690_v51 = vsel %vm316_vm0, %v535_v48, 0.0 }
  0x6a   : > { %v586_v60 = vadd.f32 %v585_v8, %v1615_v45  ;;  %v686_v11 = vsel %vm316_vm0, %v531_v6, 0.0  ;;  %v1976_v45 = vld [vmem:[#allocation22_spill] sm:$0xff]  ;;  %v634_v8 = vsel %vm316_vm0, %v1651_v13, 0.0  ;;  %v692_v15 = vsel %vm316_vm0, %v537_v57, 0.0  ;;  %v1987_v57 = vld [vmem:[#allocation36_spill] sm:$0xff] }
  0x6b   : > { %v623_v62 = vadd.f32 %v622_v26, %v621_v7  ;;  %v684_v26 = vsel %vm316_vm0, %v529_v29, 0.0  ;;  %v630_v29 = vsel %vm316_vm0, %v1634_v0, 0.0  ;;  %v534_v7 = vmul.f32 %v1976_v45, %v1976_v45 }
  0x6c   : > { %v587_v25 = vadd.f32 %v586_v60, %v1621_v54  ;;  %v685_v12 = vadd.f32 %v684_v26, %v683_v42  ;;  %v688_v17 = vsel %vm316_vm0, %v533_v41, 0.0  ;;  %v1978_v54 = vld [vmem:[#allocation25_spill] sm:$0xff] }
  0x6d   : > { %v625_v32 = vadd.f32 %v624_v27, %v623_v62  ;;  %v656_v27 = vadd.f32 %v655_v14, %v528_v22  ;;  %v632_v22 = vsel %vm316_vm0, %v1642_v16, 0.0  ;;  %v536_v47 = vmul.f32 %v1978_v54, %v1978_v54  ;;  %v1979_v62 = vld [vmem:[#allocation28_spill] sm:$0xff] }
  0x6e   : > { %v588_v19 = vadd.f32 %v587_v25, %v1630_v56  ;;  %v687_v0 = vadd.f32 %v686_v11, %v685_v12  ;;  %v539_v28 = vmul.f32 %v1979_v62, %v1979_v62  ;;  %v1980_v56 = vld [vmem:[#allocation27_spill] sm:$0xff]  ;;  %v636_v14 = vsel %vm316_vm0, %v1659_v31, 0.0  ;;  %v1985_v11 = vld [vmem:[#allocation34_spill] sm:$0xff] }
  0x6f   : > { %v627_v53 = vadd.f32 %v626_v63, %v625_v32  ;;  %v657_v50 = vadd.f32 %v656_v27, %v530_v40  ;;  %v538_v63 = vmul.f32 %v1980_v56, %v1980_v56  ;;  %v1981_v40 = vld [vmem:[#allocation30_spill] sm:$0xff]  ;;  %v545_v25 = vmul.f32 %v1985_v11, %v1985_v11 }
  0x70   : > { %v589_v21 = vadd.f32 %v588_v19, %v1638_v1  ;;  %v689_v16 = vadd.f32 %v688_v17, %v687_v0  ;;  %v541_v33 = vmul.f32 %v1981_v40, %v1981_v40  ;;  %v1982_v1 = vld [vmem:[#allocation29_spill] sm:$0xff]  ;;  %v694_v42 = vsel %vm316_vm0, %v539_v28, 0.0  ;;  %v1997_v11 = vld [vmem:[#allocation46_spill] sm:$0xff] }
  0x71   : > { %v629_v58 = vadd.f32 %v628_v23, %v627_v53  ;;  %v658_v6 = vadd.f32 %v657_v50, %v532_v36  ;;  %v540_v26 = vmul.f32 %v1982_v1, %v1982_v1  ;;  %v1983_v23 = vld [vmem:[#allocation32_spill] sm:$0xff]  ;;  %v640_v12 = vsel %vm316_vm0, %v1668_v30, 0.0 }
  0x72   : > { %v590_v41 = vadd.f32 %v589_v21, %v1646_v59  ;;  %v691_v13 = vadd.f32 %v690_v51, %v689_v16  ;;  %v543_v55 = vmul.f32 %v1983_v23, %v1983_v23  ;;  %v1984_v59 = vld [vmem:[#allocation31_spill] sm:$0xff]  ;;  %v696_v45 = vsel %vm316_vm0, %v541_v33, 0.0  ;;  %v571_v33 = vld [vmem:[#allocation2 + $0x8] sm:$0xff] }
  0x73   : > { %v631_v3 = vadd.f32 %v630_v29, %v629_v58  ;;  %v659_v32 = vadd.f32 %v658_v6, %v534_v7  ;;  %v542_v48 = vmul.f32 %v1984_v59, %v1984_v59  ;;  %v547_v50 = vmul.f32 %v1987_v57, %v1987_v57 }
  0x74   : > { %v591_v53 = vadd.f32 %v590_v41, %v1655_v39  ;;  %v693_v31 = vadd.f32 %v692_v15, %v691_v13  ;;  %v1986_v39 = vld [vmem:[#allocation33_spill] sm:$0xff]  ;;  %v698_v19 = vsel %vm316_vm0, %v543_v55, 0.0  ;;  %v642_v54 = vsel %vm316_vm0, %v1672_v9, 0.0  ;;  %v1992_v15 = vld [vmem:[#allocation39_spill] sm:$0xff] }
  0x75   : > { %v633_v35 = vadd.f32 %v632_v22, %v631_v3  ;;  %v660_v36 = vadd.f32 %v659_v32, %v536_v47  ;;  %v544_v58 = vmul.f32 %v1986_v39, %v1986_v39  ;;  %v1989_v3 = vld [vmem:[#allocation38_spill] sm:$0xff]  ;;  %v700_v6 = vsel %vm316_vm0, %v545_v25, 0.0 }
  0x76   : > { %v592_v7 = vadd.f32 %v591_v53, %v1661_v52  ;;  %v695_v38 = vadd.f32 %v694_v42, %v693_v31  ;;  %v1988_v52 = vld [vmem:[#allocation35_spill] sm:$0xff]  ;;  %v549_v62 = vmul.f32 %v1989_v3, %v1989_v3  ;;  %v644_v21 = vsel %vm316_vm0, %v1683_v49, 0.0  ;;  %v1993_v49 = vld [vmem:[#allocation42_spill] sm:$0xff]  ;;  %v1995_v42 = vld [vmem:[#allocation44_spill] sm:$0xff] }
  0x77   : > { %v635_v60 = vadd.f32 %v634_v8, %v633_v35  ;;  %v661_v29 = vadd.f32 %v660_v36, %v538_v63  ;;  %v546_v47 = vmul.f32 %v1988_v52, %v1988_v52  ;;  %v1991_v63 = vld [vmem:[#allocation40_spill] sm:$0xff]  ;;  %v702_v40 = vsel %vm316_vm0, %v547_v50, 0.0  ;;  %v1996_v31 = vld [vmem:[#allocation43_spill] sm:$0xff] }
  0x78   : > { %v593_v22 = vadd.f32 %v592_v7, %v1666_v61  ;;  %v697_v30 = vadd.f32 %v696_v45, %v695_v38  ;;  %v1990_v61 = vld [vmem:[#allocation37_spill] sm:$0xff]  ;;  %v551_v16 = vmul.f32 %v1991_v63, %v1991_v63  ;;  %v553_v1 = vmul.f32 %v1993_v49, %v1993_v49  ;;  %v1999_v38 = vld [vmem:[#allocation48_spill] sm:$0xff] }
  0x79   : > { %v637_v27 = vadd.f32 %v636_v14, %v635_v60  ;;  %v662_v17 = vadd.f32 %v661_v29, %v540_v26  ;;  %v548_v8 = vmul.f32 %v1990_v61, %v1990_v61  ;;  %v704_v13 = vsel %vm316_vm0, %v549_v62, 0.0  ;;  %v1994_v60 = vld [vmem:[#allocation41_spill] sm:$0xff] }
  0x7a   : > { %v594_v51 = vadd.f32 %v593_v22, %v1670_v4  ;;  %v699_v9 = vadd.f32 %v698_v19, %v697_v30  ;;  %v550_v4 = vmul.f32 %v1992_v15, %v1992_v15  ;;  %v552_v23 = vmul.f32 %v1994_v60, %v1994_v60  ;;  %v1998_v7 = vld [vmem:[#allocation45_spill] sm:$0xff]  ;;  %v2000_v19 = vld [vmem:[#allocation47_spill] sm:$0xff] }
  0x7b   : > { %v639_v37 = vadd.f32 %v638_v2, %v637_v27  ;;  %v663_v28 = vadd.f32 %v662_v17, %v542_v48  ;;  %v555_v53 = vmul.f32 %v1995_v42, %v1995_v42  ;;  %v706_v2 = vsel %vm316_vm0, %v551_v16, 0.0 }
  0x7c   : > { %v595_v32 = vadd.f32 %v594_v51, %v1674_v46  ;;  %v701_v41 = vadd.f32 %v700_v6, %v699_v9  ;;  %v554_v27 = vmul.f32 %v1996_v31, %v1996_v31  ;;  %v557_v25 = vmul.f32 %v1997_v11, %v1997_v11 }
  0x7d   : > { %v641_v0 = vadd.f32 %v640_v12, %v639_v37  ;;  %v664_v35 = vadd.f32 %v663_v28, %v544_v58  ;;  %v708_v45 = vsel %vm316_vm0, %v553_v1, 0.0  ;;  %v556_v12 = vmul.f32 %v1998_v7, %v1998_v7  ;;  %v2002_v28 = vld [vmem:[#allocation49_spill] sm:$0xff] }
  0x7e   : > { %v703_v55 = vadd.f32 %v702_v40, %v701_v41  ;;  %v735_v59 = vrot.slane %v595_v32, 4  ;;  %v559_v37 = vmul.f32 %v1999_v38, %v1999_v38  ;;  %v710_v50 = vsel %vm316_vm0, %v555_v53, 0.0 }
  0x7f   : > { %v643_v56 = vadd.f32 %v642_v54, %v641_v0  ;;  %v665_v26 = vadd.f32 %v664_v35, %v546_v47  ;;  %v558_v22 = vmul.f32 %v2000_v19, %v2000_v19  ;;  %v2001_v54 = vld [vmem:[#allocation50_spill] sm:$0xff]  ;;  %v712_v30 = vsel %vm316_vm0, %v557_v25, 0.0 }
  0x80   : > { %v705_v48 = vadd.f32 %v704_v13, %v703_v55  ;;  %v736_v58 = vadd.f32 %v735_v59, %v595_v32  ;;  %v561_v52 = vmul.f32 %v2001_v54, %v2001_v54  ;;  %v563_v0 = vmul.f32 %v1508_v43, %v1508_v43  ;;  %v652_v59 = vld [vmem:[#allocation2 + $0x18] sm:$0xff] }
  0x81   : > { %v645_v14 = vadd.f32 %v644_v21, %v643_v56  ;;  %v666_v46 = vadd.f32 %v665_v26, %v548_v8  ;;  %v560_v6 = vmul.f32 %v2002_v28, %v2002_v28  ;;  %v714_v21 = vsel %vm316_vm0, %v559_v37, 0.0 }
  0x82   : > { %v707_v39 = vadd.f32 %v706_v2, %v705_v48  ;;  %v737_v62 = vrot.slane %v736_v58, 2  ;;  %v565_v8 = vmul.f32 %v1526_v24, %v1526_v24  ;;  %v562_v63 = vmul.f32 %v1505_v34, %v1505_v34 }
  0x83   : > { %v647_v36 = vadd.f32 %v645_v14, %v571_v33  ;;  %v667_v29 = vadd.f32 %v666_v46, %v550_v4  ;;  %v716_v43 = vsel %vm316_vm0, %v561_v52, 0.0  ;;  %v567_v40 = vmul.f32 %v1544_v5, %v1544_v5 }
  0x84   : > { %v709_v17 = vadd.f32 %v708_v45, %v707_v39  ;;  %v738_v32 = vadd.f32 %v737_v62, %v736_v58  ;;  %v564_v15 = vmul.f32 %v1523_v44, %v1523_v44  ;;  %v718_v24 = vsel %vm316_vm0, %v563_v0, 0.0 }
  0x85   : > { %649 = vst.msk [vmem:[#allocation2 + $0x8] sm:$0xff] %vm316_vm0, %v647_v36  ;;  %v668_v57 = vadd.f32 %v667_v29, %v552_v23  ;;  %v566_v34 = vmul.f32 %v1541_v18, %v1541_v18  ;;  %v569_v49 = vmul.f32 %v1563_v10, %v1563_v10  ;;  %v720_v26 = vsel %vm316_vm0, %v565_v8, 0.0 }
  0x86   : > { %v711_v3 = vadd.f32 %v710_v50, %v709_v17  ;;  %v739_v60 = vrot.slane %v738_v32, 1  ;;  %v568_v44 = vmul.f32 %v1555_v20, %v1555_v20  ;;  %v722_v55 = vsel %vm316_vm0, %v567_v40, 0.0 }
  0x87   : > { %v669_v47 = vadd.f32 %v668_v57, %v554_v27  ;;  %v724_v18 = vsel %vm316_vm0, %v569_v49, 0.0 }
  0x88   : > { %v713_v9 = vadd.f32 %v712_v30, %v711_v3  ;;  %v740_v10 = vadd.f32 %v739_v60, %v738_v32 }
  0x89   : > { %v670_v51 = vadd.f32 %v669_v47, %v556_v12 }
  0x8a   : > { %v715_v33 = vadd.f32 %v714_v21, %v713_v9 }
  0x8b   : > { %v671_v16 = vadd.f32 %v670_v51, %v558_v22 }
  0x8c   : > { %v734_v61 = vld [vmem:[#allocation2 + $0x8] sm:$0xff]  ;;  %v717_v14 = vadd.f32 %v716_v43, %v715_v33 }
  0x8d   : > { %v741_v56 = vsel %vm316_vm0, %v734_v61, 0.0  ;;  %v672_v4 = vadd.f32 %v671_v16, %v560_v6 }
  0x8e   : > { %v742_v35 = vrot.slane %v741_v56, 4  ;;  %v719_v13 = vadd.f32 %v718_v24, %v717_v14 }
  0x8f   : > { %v673_v1 = vadd.f32 %v672_v4, %v562_v63 }
  0x90   : > { %v743_v41 = vadd.f32 %v742_v35, %v741_v56  ;;  %v721_v42 = vadd.f32 %v720_v26, %v719_v13 }
  0x91   : > { %v674_v23 = vadd.f32 %v673_v1, %v564_v15 }
  0x92   : > { %v744_v5 = vrot.slane %v743_v41, 2  ;;  %v723_v2 = vadd.f32 %v722_v55, %v721_v42 }
  0x93   : > { %v675_v53 = vadd.f32 %v674_v23, %v566_v34 }
  0x94   : > { %v745_v36 = vadd.f32 %v744_v5, %v743_v41  ;;  %v725_v27 = vadd.f32 %v724_v18, %v723_v2 }
  0x95   : > { %v676_v48 = vadd.f32 %v675_v53, %v568_v44 }
  0x96   : > { %v746_v46 = vrot.slane %v745_v36, 1  ;;  %v727_v25 = vadd.f32 %v725_v27, %v652_v59 }
  0x97   : > { %v756_v20 = vrot.slane %v676_v48, 4 }
  0x98   : > { %v747_v31 = vadd.f32 %v746_v46, %v745_v36  ;;  %729 = vst.msk [vmem:[#allocation2 + $0x18] sm:$0xff] %vm316_vm0, %v727_v25 }
  0x99   : > { %v757_v45 = vadd.f32 %v756_v20, %v676_v48 }
  0x9a   : > { %v748_v11 = vsel %vm316_vm0, %v747_v31, 0.0 }
  0x9b   : > { %v749_v29 = vadd.f32 %v748_v11, %v740_v10  ;;  %v758_v7 = vrot.slane %v757_v45, 2 }
  0x9d   : > { %750 = vadd.xlane.f32.xlu0 %v749_v29  ;;  %v759_v38 = vadd.f32 %v758_v7, %v757_v45 }
  0x9f   : > { %v755_v12 = vld [vmem:[#allocation2 + $0x18] sm:$0xff]  ;;  %v760_v50 = vrot.slane %v759_v38, 1 }
  0xa0   : > { %v762_v39 = vsel %vm316_vm0, %v755_v12, 0.0 }
  0xa1   : > { %v763_v58 = vrot.slane %v762_v39, 4  ;;  %v761_v22 = vadd.f32 %v760_v50, %v759_v38 }
  0xa3   : > { %v764_v37 = vadd.f32 %v763_v58, %v762_v39 }
  0xa5   : > { %v765_v57 = vrot.slane %v764_v37, 2 }
  0xa7   : > { %v766_v17 = vadd.f32 %v765_v57, %v764_v37 }
  0xa9   : > { %v767_v19 = vrot.slane %v766_v17, 1 }
  0xab   : > { %v768_v54 = vadd.f32 %v767_v19, %v766_v17 }
  0xad   : > { %v769_v52 = vsel %vm316_vm0, %v768_v54, 0.0 }
  0xae   : > { %v770_v47 = vadd.f32 %v769_v52, %v761_v22 }
  0xb0   : > { %771 = vadd.xlane.f32.xlu0 %v770_v47 }
 0x110   : > { %v751_v30 = vpop.xlane.xlu0 %750 }
 0x111   : > { %753 = vst.msk [vmem:[%s304_s30] sm:$0x1] %vm752_vm1, %v751_v30 }
 0x123   : > { %v772_v0 = vpop.xlane.xlu0 %771 }
 0x124   : > { %773 = vst.msk [vmem:[%s310_s8] sm:$0x1] %vm752_vm1, %v772_v0 }
 0x125 PF: > { %s20_s17 = sadd.s32 1, %s1109_s17   ;;  %s2003_s12 = smov %s1093_s13 }
 0x126   : > { %p17_p0 = scmp.ge.s32.totalorder %s20_s17, 4   ;;  %s2004_s13 = smov %s1097_s14 }
 0x127   : > { %s2005_s14 = smov %s1179_s23  ;;  %s2006_s15 = smov %s1105_s16 }
 0x128   : > { %s2007_s16 = smov %s2009_s19  ;;  %19 = sbr.rel (!%p17_p0) target bundleno = 6 (0x6), region = 102 }
 0x12d   :  { %815 = vsyncpa [#allocation4], 1 }
 0x12e   :  { %817 = vsyncpa [#allocation4 + $0x1], 1 }
 0x12f   :  { %818 = vsyncpa [#allocation6], 1 }
 0x130   :  { %820 = vsyncpa [#allocation6 + $0x1], 1 }

</bundles_post_ra>
